<compile_context>
chip_gen: v7x
topology: tpu7x:2x2x1
jax: 0.10.0
libtpu: 0.0.40
codegen_flags: <defaults>
</compile_context>

<pallas_src>
import jax
import jax.numpy as jnp
from jax.experimental import pallas as pl
from jax.experimental.pallas import tpu as pltpu

FEAT_DIM = 504     # classifier input dim from nn.Linear(504, 2)
NUM_CLS = 2
FEAT_PAD = 512     # 504 -> 512: multiple of 128 lanes
CLS_PAD = 128      # 2 -> 128: lane-dense output slab
LANE = 128
SUBLANE = 8


def _round_up(x, m):
    return (x + m - 1) // m * m


def contrasnet_classify_kernel(x_ref, w0_ref, b0_ref, w1_ref, b1_ref,
                               o_ref, acc_ref):
    """K-tiled backbone stand-in matmul + classifier + sigmoid (fused)."""
    k = pl.program_id(1)

    @pl.when(k == 0)
    def _():
        acc_ref[...] = jnp.zeros_like(acc_ref)

    # TODO(synk): real backbone.forward_once is torch.load()'d (architecture
    # unknown); this bf16 linear projection is a deterministic stand-in.
    acc_ref[...] += jnp.dot(x_ref[...], w0_ref[...],
                            preferred_element_type=jnp.float32)

    @pl.when(k == pl.num_programs(1) - 1)
    def _():
        # Epilogue stays f32 (v5e VPU/EUP have no bf16 path).
        feat = acc_ref[...] + b0_ref[...]                          # (tm, 512)
        logits = jnp.dot(feat, w1_ref[...],
                         preferred_element_type=jnp.float32) + b1_ref[...]
        # sigmoid = 1 / (1 + exp(-x)); reciprocal on the (idle) EUP slot.
        o_ref[...] = pl.reciprocal(1.0 + jnp.exp(-logits), approx=True)


def contrasnet_classify(x_nchw, w0, b0, w1, b1):
    """x_nchw: (B, C, H, W) f32; w0: (C*H*W, 504); b0: (504,); w1: (504, 2);
    b1: (2,). Returns (B, 2) f32 probabilities."""
    B = x_nchw.shape[0]
    x2d = x_nchw.reshape(B, -1).astype(jnp.float32)
    in_dim = x2d.shape[1]

    # ---- tile sizing ------------------------------------------------------
    in_dim_p = _round_up(in_dim, LANE)
    tk = min(in_dim_p, 512)                  # K tile (fits every VMEM budget)
    in_dim_p = _round_up(in_dim_p, tk)

    b_p = _round_up(B, SUBLANE)
    tm = 128 if b_p >= 128 else b_p          # batch tile
    b_p = _round_up(b_p, tm)

    # ---- host-side padding / dtype prep -----------------------------------
    # bf16 for the bandwidth-dominant x / w0 streams; f32 for the rest.
    x_p = jnp.zeros((b_p, in_dim_p), jnp.bfloat16)
    x_p = x_p.at[:B, :in_dim].set(x2d.astype(jnp.bfloat16))
    w0_p = jnp.zeros((in_dim_p, FEAT_PAD), jnp.bfloat16)
    w0_p = w0_p.at[:in_dim, :FEAT_DIM].set(w0.astype(jnp.bfloat16))
    b0_p = jnp.zeros((1, FEAT_PAD), jnp.float32)
    b0_p = b0_p.at[:, :FEAT_DIM].set(b0.reshape(1, FEAT_DIM).astype(jnp.float32))
    w1_p = jnp.zeros((FEAT_PAD, CLS_PAD), jnp.float32)
    w1_p = w1_p.at[:FEAT_DIM, :NUM_CLS].set(w1.astype(jnp.float32))
    b1_p = jnp.zeros((1, CLS_PAD), jnp.float32)
    b1_p = b1_p.at[:, :NUM_CLS].set(b1.reshape(1, NUM_CLS).astype(jnp.float32))

    grid = (b_p // tm, in_dim_p // tk)

    cost = pl.CostEstimate(
        flops=2 * b_p * in_dim_p * FEAT_PAD + 2 * b_p * FEAT_PAD * CLS_PAD,
        transcendentals=b_p * CLS_PAD,
        bytes_accessed=(x_p.size * 2 + w0_p.size * 2
                        + (b0_p.size + w1_p.size + b1_p.size) * 4
                        + b_p * CLS_PAD * 4),
    )

    out = pl.pallas_call(
        contrasnet_classify_kernel,
        out_shape=jax.ShapeDtypeStruct((b_p, CLS_PAD), jnp.float32),
        grid_spec=pltpu.PrefetchScalarGridSpec(
            num_scalar_prefetch=0,
            grid=grid,
            in_specs=[
                pl.BlockSpec((tm, tk), lambda i, k: (i, k)),          # x
                pl.BlockSpec((tk, FEAT_PAD), lambda i, k: (k, 0)),    # w0
                pl.BlockSpec((1, FEAT_PAD), lambda i, k: (0, 0)),     # b0
                pl.BlockSpec((FEAT_PAD, CLS_PAD), lambda i, k: (0, 0)),  # w1
                pl.BlockSpec((1, CLS_PAD), lambda i, k: (0, 0)),      # b1
            ],
            out_specs=pl.BlockSpec((tm, CLS_PAD), lambda i, k: (i, 0)),
            scratch_shapes=[pltpu.VMEM((tm, FEAT_PAD), jnp.float32)],
        ),
        compiler_params=pltpu.CompilerParams(
            dimension_semantics=("parallel", "arbitrary"),
            vmem_limit_bytes=32 * 1024 * 1024,   # safe on v5e/v6e/v7x
        ),
        cost_estimate=cost,
    )(x_p, w0_p, b0_p, w1_p, b1_p)

    # Strip batch / class padding.
    return out[:B, :NUM_CLS]


if __name__ == "__main__":
    # Small, deterministic example consistent with the module's forward.
    B, C, H, W = 2, 4, 16, 16
    IN_DIM = C * H * W

    key = jax.random.PRNGKey(0)
    kx, k0, kb0, k1, kb1 = jax.random.split(key, 5)

    x = jax.random.normal(kx, (B, C, H, W), dtype=jnp.float32)

    # Synthetic backbone projection (stand-in for backbone.forward_once).
    w0 = jax.random.normal(k0, (IN_DIM, FEAT_DIM), dtype=jnp.float32) * 0.02
    b0 = jax.random.normal(kb0, (FEAT_DIM,), dtype=jnp.float32) * 0.02

    # Classifier nn.Linear(504, 2) parameters (deterministic init).
    w1 = jax.random.normal(k1, (FEAT_DIM, NUM_CLS), dtype=jnp.float32) * 0.05
    b1 = jax.random.normal(kb1, (NUM_CLS,), dtype=jnp.float32) * 0.05

    out = contrasnet_classify(x, w0, b0, w1, b1)
    out = jax.block_until_ready(out)

    # Pure-JAX f32 reference (kernel uses bf16 x/w0 -> loosened tolerance).
    x2d = x.reshape(B, -1)
    ref = jax.nn.sigmoid((x2d @ w0 + b0[None, :]) @ w1 + b1[None, :])
    assert out.shape == (B, NUM_CLS)
    err = jnp.max(jnp.abs(out - ref))
    assert jnp.allclose(out, ref, atol=2e-2), f"mismatch vs reference: {err}"

    print("KERNEL_OK")
</pallas_src>

<mosaic_0001>
module attributes {stable_mosaic.version = 11 : i64} {
  func.func @contrasnet_classify_kernel(%arg0: i32, %arg1: i32, %arg2: memref<8x512xbf16, #tpu.memory_space<vmem>>, %arg3: memref<512x512xbf16, #tpu.memory_space<vmem>>, %arg4: memref<1x512xf32, #tpu.memory_space<vmem>>, %arg5: memref<512x128xf32, #tpu.memory_space<vmem>>, %arg6: memref<1x128xf32, #tpu.memory_space<vmem>>, %arg7: memref<8x128xf32, #tpu.memory_space<vmem>>, %arg8: memref<8x512xf32, #tpu.memory_space<vmem>>) attributes {dimension_semantics = [#tpu.dimension_semantics<parallel>, #tpu.dimension_semantics<arbitrary>], iteration_bounds = array<i64: 1, 2>, scalar_prefetch = 0 : i64, scratch_operands = 1 : i64, tpu.core_type = #tpu.core_type<tc>, window_params = [{transform_indices = @transform_0, window_bounds = array<i64: 8, 512>}, {transform_indices = @transform_1, window_bounds = array<i64: 512, 512>}, {pipeline_mode = #tpu.pipeline_mode<synchronous>, transform_indices = @transform_2, window_bounds = array<i64: 1, 512>}, {pipeline_mode = #tpu.pipeline_mode<synchronous>, transform_indices = @transform_3, window_bounds = array<i64: 512, 128>}, {pipeline_mode = #tpu.pipeline_mode<synchronous>, transform_indices = @transform_4, window_bounds = array<i64: 1, 128>}, {transform_indices = @transform_5, window_bounds = array<i64: 8, 128>}]} {
    %c0_i32 = arith.constant 0 : i32
    %0 = arith.cmpi eq, %arg1, %c0_i32 : i32
    %1 = arith.extui %0 : i1 to i32
    %c0_i32_0 = arith.constant 0 : i32
    %2 = arith.cmpi ne, %1, %c0_i32_0 : i32
    scf.if %2 {
      %cst_9 = arith.constant 0.000000e+00 : f32
      %12 = vector.broadcast %cst_9 : f32 to vector<8x512xf32>
      %c0_10 = arith.constant 0 : index
      %c0_11 = arith.constant 0 : index
      %13 = vector.load %arg8[%c0_10, %c0_11] : memref<8x512xf32, #tpu.memory_space<vmem>>, vector<8x512xf32>
      tpu.vector_store %arg8[%c0_10, %c0_11], %12 {strides = array<i32>} : memref<8x512xf32, #tpu.memory_space<vmem>>, vector<8x512xf32>,
    } else {
    }
    %c0 = arith.constant 0 : index
    %c0_1 = arith.constant 0 : index
    %3 = vector.load %arg8[%c0, %c0_1] : memref<8x512xf32, #tpu.memory_space<vmem>>, vector<8x512xf32>
    %c0_2 = arith.constant 0 : index
    %c0_3 = arith.constant 0 : index
    %4 = vector.load %arg2[%c0_2, %c0_3] : memref<8x512xbf16, #tpu.memory_space<vmem>>, vector<8x512xbf16>
    %c0_4 = arith.constant 0 : index
    %c0_5 = arith.constant 0 : index
    %5 = vector.load %arg3[%c0_4, %c0_5] : memref<512x512xbf16, #tpu.memory_space<vmem>>, vector<512x512xbf16>
    %cst = arith.constant dense<0.000000e+00> : vector<8x512xf32>
    %6 = tpu.matmul %4, %5, %cst {dimension_numbers = #tpu.dot_dimension_numbers<[1], [0], [0], [1], [0, 0, 1, 1], [], []>} : vector<8x512xbf16>, vector<512x512xbf16>, vector<8x512xf32> -> vector<8x512xf32>
    %7 = arith.addf %3, %6 : vector<8x512xf32>
    %c0_6 = arith.constant 0 : index
    %c0_7 = arith.constant 0 : index
    %8 = vector.load %arg8[%c0_6, %c0_7] : memref<8x512xf32, #tpu.memory_space<vmem>>, vector<8x512xf32>
    tpu.vector_store %arg8[%c0_6, %c0_7], %7 {strides = array<i32>} : memref<8x512xf32, #tpu.memory_space<vmem>>, vector<8x512xf32>,
    %c1_i32 = arith.constant 1 : i32
    %9 = arith.cmpi eq, %arg1, %c1_i32 : i32
    %10 = arith.extui %9 : i1 to i32
    %c0_i32_8 = arith.constant 0 : i32
    %11 = arith.cmpi ne, %10, %c0_i32_8 : i32
    scf.if %11 {
      %c0_9 = arith.constant 0 : index
      %c0_10 = arith.constant 0 : index
      %12 = vector.load %arg8[%c0_9, %c0_10] : memref<8x512xf32, #tpu.memory_space<vmem>>, vector<8x512xf32>
      %c0_11 = arith.constant 0 : index
      %c0_12 = arith.constant 0 : index
      %13 = vector.load %arg4[%c0_11, %c0_12] : memref<1x512xf32, #tpu.memory_space<vmem>>, vector<1x512xf32>
      %14 = vector.broadcast %13 : vector<1x512xf32> to vector<8x512xf32>
      %15 = arith.addf %12, %14 : vector<8x512xf32>
      %c0_13 = arith.constant 0 : index
      %c0_14 = arith.constant 0 : index
      %16 = vector.load %arg5[%c0_13, %c0_14] : memref<512x128xf32, #tpu.memory_space<vmem>>, vector<512x128xf32>
      %cst_15 = arith.constant dense<0.000000e+00> : vector<8x128xf32>
      %17 = tpu.matmul %15, %16, %cst_15 {dimension_numbers = #tpu.dot_dimension_numbers<[1], [0], [0], [1], [0, 0, 1, 1], [], []>} : vector<8x512xf32>, vector<512x128xf32>, vector<8x128xf32> -> vector<8x128xf32>
      %c0_16 = arith.constant 0 : index
      %c0_17 = arith.constant 0 : index
      %18 = vector.load %arg6[%c0_16, %c0_17] : memref<1x128xf32, #tpu.memory_space<vmem>>, vector<1x128xf32>
      %19 = vector.broadcast %18 : vector<1x128xf32> to vector<8x128xf32>
      %20 = arith.addf %17, %19 : vector<8x128xf32>
      %cst_18 = arith.constant 0.000000e+00 : f32
      %21 = vector.broadcast %cst_18 : f32 to vector<8x128xf32>
      %22 = arith.subf %21, %20 : vector<8x128xf32>
      %23 = math.exp %22 : vector<8x128xf32>
      %cst_19 = arith.constant 1.000000e+00 : f32
      %24 = vector.broadcast %cst_19 : f32 to vector<8x128xf32>
      %25 = arith.addf %24, %23 : vector<8x128xf32>
      %26 = tpu.reciprocal %25 {approx = true} : vector<8x128xf32> -> vector<8x128xf32>
      %c0_20 = arith.constant 0 : index
      %c0_21 = arith.constant 0 : index
      %27 = vector.load %arg7[%c0_20, %c0_21] : memref<8x128xf32, #tpu.memory_space<vmem>>, vector<8x128xf32>
      tpu.vector_store %arg7[%c0_20, %c0_21], %26 {strides = array<i32>} : memref<8x128xf32, #tpu.memory_space<vmem>>, vector<8x128xf32>,
    } else {
    }
    return
  }
  func.func @transform_0(%arg0: i32, %arg1: i32) -> (i32, i32) {
    %c0_i32 = arith.constant 0 : i32
    return %arg0, %arg1 : i32, i32
  }
  func.func @transform_1(%arg0: i32, %arg1: i32) -> (i32, i32) {
    %c0_i32 = arith.constant 0 : i32
    %c0_i32_0 = arith.constant 0 : i32
    return %arg1, %c0_i32 : i32, i32
  }
  func.func @transform_2(%arg0: i32, %arg1: i32) -> (i32, i32) {
    %c0_i32 = arith.constant 0 : i32
    %c0_i32_0 = arith.constant 0 : i32
    %c0_i32_1 = arith.constant 0 : i32
    return %c0_i32, %c0_i32_0 : i32, i32
  }
  func.func @transform_3(%arg0: i32, %arg1: i32) -> (i32, i32) {
    %c0_i32 = arith.constant 0 : i32
    %c0_i32_0 = arith.constant 0 : i32
    %c0_i32_1 = arith.constant 0 : i32
    return %c0_i32, %c0_i32_0 : i32, i32
  }
  func.func @transform_4(%arg0: i32, %arg1: i32) -> (i32, i32) {
    %c0_i32 = arith.constant 0 : i32
    %c0_i32_0 = arith.constant 0 : i32
    %c0_i32_1 = arith.constant 0 : i32
    return %c0_i32, %c0_i32_0 : i32, i32
  }
  func.func @transform_5(%arg0: i32, %arg1: i32) -> (i32, i32) {
    %c0_i32 = arith.constant 0 : i32
    %c0_i32_0 = arith.constant 0 : i32
    return %arg0, %c0_i32 : i32, i32
  }
}

</mosaic_0001>

<bundles_post_ra>
// kernel: tpu_custom_call.1
= control target key start
LH: loop header
LB: loop body
LE: loop exit
PB: predicated region body
PF: predicated region fallthrough
CT: control target
= control target key end

     0   :  { %10 = vsyncpa [#allocation4], 0  ;;  %s2801_s0 = inlined_call_operand.hbm [shape: bf16[8,1024], index: 0, kind: input, shape index: {}]   ;;  %s2802_s1 = inlined_call_operand.hbm [shape: bf16[1024,512], index: 1, kind: input, shape index: {}]   ;;  %s2803_s2 = inlined_call_operand.vmem [shape: f32[1,512], index: 2, kind: input, shape index: {}]   ;;  %s2804_s3 = inlined_call_operand.hbm [shape: f32[512,128], index: 3, kind: input, shape index: {}]   ;;  %s2805_s4 = inlined_call_operand.vmem [shape: f32[1,128], index: 4, kind: input, shape index: {}]   ;;  %s2806_s5 = inlined_call_operand.hbm [shape: f32[8,128], index: 5, kind: output, shape index: {}]  }
   0x1   :  { %12 = vsyncpa [#allocation4 + $0x1], 0 }
   0x2   :  { %13 = vsyncpa [#allocation7], 0 }
   0x3   :  { %15 = vsyncpa [#allocation7 + $0x1], 0 }
   0x4   :  { %16 = vsyncpa [#allocation5], 0  ;;  %s2422_s18 = smov 0   ;;  %s2424_s19 = smov 0  }
   0x5   :  { %s2426_s20 = smov 0   ;;  %s2428_s21 = smov 0  }
   0x6   :  { %s2430_s22 = smov 0   ;;  %s2432_s23 = smov 0  }
   0x7 LB: > { %s2451_s24 = sadd.s32 4294967295, %s2381_s23   ;;  %p56_p0 = scmp.ne.s32.totalorder %s2365_s19, %s2361_s18  ;;  %s2381_s23 = sphi %s2432_s23, %s22_s23   ;;  %s2377_s22 = sphi %s2430_s22, %s2822_s22   ;;  %s2373_s21 = sphi %s2428_s21, %s2821_s21   ;;  %s2369_s20 = sphi %s2426_s20, %s2820_s20   ;;  %s2365_s19 = sphi %s2424_s19, %s2819_s19   ;;  %s2361_s18 = sphi %s2422_s18, %s2818_s18  }
   0x8   : > { %p2807_p1 = scmp.eq.s32.totalorder %s2451_s24, 0  ;;  %p1632_p2 = scmp.ge.s32.totalorder %s2381_s23, 1 }
   0x9   : > { %p182_p3 = scmp.lt.s32.totalorder %s2381_s23, 3  ;;  %s2383_s27 = smov [#allocation8]  }
   0xa   : > { %p2459_p4 = por %p2807_p1, %p56_p0  ;;  %s197_s28 = sshll.u32 %s2383_s27, 4  ;;  %s198_s28 = int_to_ptr.vmem [resolvable:$true] %s197_s28 }
   0xb   : > { %p2463_p5 = pnand %p1632_p2, %p182_p3  ;;  %s31_s30 = sadd.s32 1, %s2377_s22 }
   0xc   : > { %s2810_s25 = scalar_select %p2459_p4, 1, 0 }
   0xd   : > { %s2811_s26 = scalar_select %p2463_p5, 1, 0 }
   0xe   : > { %p1934_p6 = pneg %p2463_p5  ;;  %s2205_s8 = scalar_lea.hbm %s2804_s3, 8192 }
   0xf   : > { %p2206_p8 = scmp.ne.s32.totalorder %s2804_s3, %s2205_s8  ;;  %p2212_p12 = scmp.lt.u32.totalorder %s2205_s8, %s2804_s3 }
  0x10   : > { %p2471_p7 = pnand %p1934_p6, %p2807_p1 }
  0x12   : > { %p2207_p9 = pneg %p2471_p7 }
  0x14   : > { %p2208_p10 = pnand %p2207_p9, %p2206_p8 }
  0x16   : > { %p2209_p11 = pneg %p2208_p10 }
  0x18   : > { %p2214_p13 = pnand %p2212_p12, %p2209_p11 }
  0x1a   : > { %2217 = shalt.err (!%p2214_p13)
}
  0x1b   : > { %s2218_s13 = scalar_lea.vmem %s198_s28, 8192  ;;  %p2226_p6 = scmp.lt.s32.totalorder %s198_s28, %s198_s28 }
  0x1c   : > { %p2219_p0 = scmp.ne.s32.totalorder %s198_s28, %s2218_s13  ;;  %p2227_p1 = scmp.lt.s32.totalorder %s2218_s13, %s2218_s13 }
  0x1e   : > { %p2221_p2 = pnand %p2219_p0, %p2207_p9  ;;  %p2228_p4 = por %p2227_p1, %p2226_p6 }
  0x20   : > { %p2222_p3 = pneg %p2221_p2 }
  0x22   : > { %p2229_p5 = pnand %p2228_p4, %p2222_p3 }
  0x24   : > { %2232 = shalt.err (!%p2229_p5)
}
  0x25   : > { %s2384_s14 = smov 128   ;;  %s2385_s15 = smov 8  }
  0x26   : > { %1937 = dma.hbm_to_vmem [thread:$0]  (!%p2471_p7), %s2804_s3, 8192, %s198_s28, [#allocation7], %s2384_s14, %s2384_s14, %s2385_s15  }
  0x27   : > { %p32_p1 = scmp.ge.s32.totalorder %s31_s30, 2  ;;  %s43_s18 = sadd.s32 1, %s2369_s20 }
  0x28   : > { %p50_p4 = scmp.ne.s32.totalorder %s2369_s20, %s2365_s19  ;;  %p51_p5 = scmp.eq.s32.totalorder %s2381_s23, 0 }
  0x29   : > { %s2824_s30 = smov (%p32_p1, %s31_s30), 0  ;;  %p1946_p9 = scmp.lt.s32.totalorder %s2381_s23, 2 }
  0x2a   : > { %p52_p8 = por %p51_p5, %p50_p4  ;;  %s39_s27 = ssub.s32 %s2377_s22, %s2824_s30 }
  0x2b   : > { %s2502_s6 = sand.u32 1, %s2369_s20   ;;  %p41_p10 = scmp.eq.s32.totalorder %s39_s27, 0 }
  0x2c   : > { %s1635_s29 = sshll.u32 %s2502_s6, 4  ;;  %s1785_s7 = sshll.u32 %s2377_s22, 8 }
  0x2d   : > { %s2507_s8 = scalar_select %p41_p10, %s2369_s20, %s43_s18  }
  0x2e   : > { %s2512_s10 = scalar_lea.hbm %s2801_s0, %s1785_s7  ;;  %s218_s11 = scalar_lea.vmem [#allocation3], %s1635_s29 }
  0x2f   : > { %s228_s12 = sshll.u32 %s218_s11, 4  ;;  %p2514_p7 = pnand %p1946_p9, %p52_p8  ;;  %s2518_s12 = int_to_ptr.vmem [resolvable:$true] %s228_s12 }
  0x30   : > { %s1638_s14 = sshll.u32 %s2502_s6, 10  ;;  %s215_s15 = scalar_lea.sflag [#allocation4], %s2502_s6 }
  0x31   : > { %s2233_s16 = scalar_lea.hbm %s2512_s10, 256  ;;  %p2235_p12 = pneg %p2514_p7 }
  0x32   : > { %p2234_p11 = scmp.ne.s32.totalorder %s2512_s10, %s2233_s16  ;;  %s2238_s27 = scalar_lea.hbm %s2801_s0, 512 }
  0x33   : > { %p2239_p2 = scmp.lt.u32.totalorder %s2512_s10, %s2801_s0  ;;  %p2240_p3 = scmp.lt.u32.totalorder %s2238_s27, %s2233_s16 }
  0x34   : > { %p2236_p13 = pnand %p2235_p12, %p2234_p11  ;;  %p2242_p1 = scmp.lt.u32.totalorder %s2233_s16, %s2512_s10 }
  0x35   : > { %p2241_p6 = por %p2240_p3, %p2239_p2 }
  0x36   : > { %p2237_p0 = pneg %p2236_p13 }
  0x37   : > { %p2243_p4 = por %p2242_p1, %p2241_p6 }
  0x39   : > { %p2244_p5 = pnand %p2243_p4, %p2237_p0 }
  0x3b   : > { %2247 = shalt.err (!%p2244_p5)
}
  0x3c   : > { %s2248_s28 = scalar_lea.vmem %s2518_s12, 256  ;;  %s2386_s9 = smov [#allocation3]  }
  0x3d   : > { %p2249_p8 = scmp.ne.s32.totalorder %s2518_s12, %s2248_s28  ;;  %s2253_s11 = sshll.u32 %s2386_s9, 4  ;;  %s2254_s11 = int_to_ptr.vmem [resolvable:$false] %s2253_s11 }
  0x3e   : > { %s2255_s17 = scalar_lea.vmem %s2254_s11, 512  ;;  %p2256_p11 = scmp.lt.s32.totalorder %s2518_s12, %s2254_s11 }
  0x3f   : > { %p2251_p9 = pnand %p2249_p8, %p2235_p12  ;;  %p2257_p13 = scmp.lt.s32.totalorder %s2255_s17, %s2248_s28 }
  0x41   : > { %p2252_p10 = pneg %p2251_p9  ;;  %p2258_p2 = por %p2257_p13, %p2256_p11 }
  0x43   : > { %p2259_p3 = pnand %p2258_p2, %p2252_p10 }
  0x45   : > { %2262 = shalt.err (!%p2259_p3)
}
  0x46   : > { %1941 = dma.hbm_to_vmem [thread:$0]  (!%p2514_p7), %s2512_s10, 256, %s2518_s12, %s215_s15  }
  0x47   : > { %s1787_s16 = sshll.u32 %s2377_s22, 14  ;;  %s239_s18 = scalar_lea.vmem [#allocation6], %s1638_s14 }
  0x48   : > { %s247_s27 = sshll.u32 %s239_s18, 4  ;;  %s235_s29 = sand.u32 1, %s2381_s23   ;;  %s2550_s27 = int_to_ptr.vmem [resolvable:$true] %s247_s27 }
  0x49   : > { %s2556_s9 = scalar_lea.hbm %s2802_s1, %s1787_s16  ;;  %s2558_s11 = scalar_lea.sflag [#allocation7], %s235_s29 }
  0x4a   : > { %s2263_s17 = scalar_lea.hbm %s2556_s9, 16384  ;;  %s2268_s12 = scalar_lea.hbm %s2802_s1, 32768 }
  0x4b   : > { %p2264_p0 = scmp.ne.s32.totalorder %s2556_s9, %s2263_s17  ;;  %p2269_p4 = scmp.lt.u32.totalorder %s2556_s9, %s2802_s1 }
  0x4c   : > { %p2270_p5 = scmp.lt.u32.totalorder %s2268_s12, %s2263_s17  ;;  %p2272_p9 = scmp.lt.u32.totalorder %s2263_s17, %s2556_s9 }
  0x4d   : > { %p2266_p6 = pnand %p2264_p0, %p2235_p12 }
  0x4e   : > { %p2271_p8 = por %p2270_p5, %p2269_p4 }
  0x4f   : > { %p2267_p1 = pneg %p2266_p6 }
  0x50   : > { %p2273_p10 = por %p2272_p9, %p2271_p8 }
  0x52   : > { %p2274_p11 = pnand %p2273_p10, %p2267_p1 }
  0x54   : > { %2277 = shalt.err (!%p2274_p11)
}
  0x55   : > { %s2278_s16 = scalar_lea.vmem %s2550_s27, 16384  ;;  %s2387_s18 = smov [#allocation6]  }
  0x56   : > { %p2279_p13 = scmp.ne.s32.totalorder %s2550_s27, %s2278_s16  ;;  %s2283_s29 = sshll.u32 %s2387_s18, 4  ;;  %s2284_s29 = int_to_ptr.vmem [resolvable:$false] %s2283_s29 }
  0x57   : > { %s2285_s7 = scalar_lea.vmem %s2284_s29, 32768  ;;  %p2286_p0 = scmp.lt.s32.totalorder %s2550_s27, %s2284_s29 }
  0x58   : > { %p2281_p2 = pnand %p2279_p13, %p2235_p12  ;;  %p2287_p6 = scmp.lt.s32.totalorder %s2285_s7, %s2278_s16 }
  0x5a   : > { %p2282_p3 = pneg %p2281_p2  ;;  %p2288_p4 = por %p2287_p6, %p2286_p0 }
  0x5c   : > { %p2289_p5 = pnand %p2288_p4, %p2282_p3 }
  0x5e   : > { %2292 = shalt.err (!%p2289_p5)
}
  0x5f   : > { %s2388_s28 = smov 256   ;;  %s2389_s17 = smov 16  }
  0x60   : > { %1944 = dma.hbm_to_vmem [thread:$0]  (!%p2514_p7), %s2556_s9, 16384, %s2550_s27, %s2558_s11, %s2388_s28, %s2388_s28, %s2389_s17  }
  0x61   : > { %p2814_p12 = scmp.ne.s32.totalorder %s2811_s26, 0 }
  0x62   : > { %s261_s6 = sand.u32 (!%p2814_p12), 1, %s2365_s19   ;;  %p2815_p1 = scmp.ne.s32.totalorder (!%p2814_p12), %s2810_s25, 0 }
  0x63   : > { %259 = sbr.rel (%p2814_p12) target bundleno = 758 (0x2f6), region = 40  ;;  %s1643_s10 = sshll.u32 (!%p2814_p12), %s261_s6, 4 }
  0x64   : > { %s262_s12 = scalar_lea.sflag (!%p2814_p12), [#allocation4], %s261_s6  ;;  %s2587_s14 = scalar_lea.vmem (!%p2814_p12), [#allocation3], %s1643_s10 }
  0x6a   : > { %2344 = dma.done.wait (%p2815_p1), %s262_s12, 256  }
  0x6b   : > { %2346 = vsyncadd (%p2815_p1), %s262_s12, 4294967040  ;;  %s270_s15 = sand.u32 1, %s2451_s24   ;;  %s1644_s13 = sshll.u32 %s261_s6, 10 }
  0x6c   : > { %s271_s27 = scalar_lea.sflag [#allocation7], %s270_s15  ;;  %s2594_s9 = scalar_lea.vmem [#allocation6], %s1644_s13 }
  0x6d   : > { %2348 = dma.done.wait (%p2815_p1), %s271_s27, 16384  }
  0x6e   : > { %2350 = vsyncadd (%p2815_p1), %s271_s27, 4294950912  ;;  %p2816_p7 = scmp.eq.s32.totalorder %s2451_s24, 0 }
  0x70   : > { %2352 = dma.done.wait (%p2816_p7), [#allocation7], 8192   ;;  %p2817_p8 = pmov %p2816_p7 }
  0x71   : > { %p1646_p9 = scmp.ne.s32.totalorder %s2373_s21, 0 }
  0x72   : > { %2354 = vsyncadd (%p2817_p8), [#allocation7], 4294959104  ;;  %v2390_v0 = vmov (!%p1646_p9), 0.0  }
  0x73   : > { %310 = sbr.rel (%p1646_p9) target bundleno = 122 (0x7a), region = 56  ;;  %311 = vst [vmem:[#allocation2] sm:$0xff] (!%p1646_p9), %v2390_v0  ;;  %312 = vst [vmem:[#allocation2 + $0x8] sm:$0xff] (!%p1646_p9), %v2390_v0 }
  0x74   : > { %313 = vst [vmem:[#allocation2 + $0x10] sm:$0xff] (!%p1646_p9), %v2390_v0  ;;  %314 = vst [vmem:[#allocation2 + $0x18] sm:$0xff] (!%p1646_p9), %v2390_v0 }
  0x7a PF: > { %v2005_v1 = vld [vmem:[%s2594_s9 + $0x4] ss:$16 sps:$4 sm:$0xff]   ;;  %v2009_v3 = vld [vmem:[%s2594_s9] ss:$16 sps:$4 sm:$0xff]   ;;  %v320_v49 = vld [vmem:[%s2587_s14 + $0x8] sm:$0xff]  ;;  %p1779_p10 = scmp.ne.s32.totalorder %s2373_s21, 1 }
  0x7b   : > { %v2007_v2 = vld [vmem:[%s2594_s9 + $0x204] ss:$16 sps:$4 sm:$0xff]   ;;  %1103 = vmatprep.subr.bf16.mxu0 %v2005_v1  ;;  %v2010_v4 = vld [vmem:[%s2594_s9 + $0x200] ss:$16 sps:$4 sm:$0xff]   ;;  %v1650_v52 = vcombine.high %v320_v49, %v320_v49 }
  0x7c   : > { %1144 = vmatprep.subr.bf16.mxu1 %v2007_v2  ;;  %v2011_v5 = vld [vmem:[%s2594_s9 + $0x24] ss:$16 sps:$4 sm:$0xff]   ;;  %1104 = vmatpush1.bf16.msra.mxu0 %v2009_v3  ;;  %v2015_v7 = vld [vmem:[%s2594_s9 + $0x20] ss:$16 sps:$4 sm:$0xff]  }
  0x7d   : > { %1145 = vmatpush1.bf16.msra.mxu1 %v2010_v4  ;;  %v2013_v6 = vld [vmem:[%s2594_s9 + $0x224] ss:$16 sps:$4 sm:$0xff]   ;;  %1105 = vmatprep.subr.bf16.mxu0 %v2011_v5  ;;  %v2016_v8 = vld [vmem:[%s2594_s9 + $0x220] ss:$16 sps:$4 sm:$0xff]   ;;  %v2107_v5 = vld [vmem:[%s2594_s9 + $0xc] ss:$16 sps:$4 sm:$0xff]  }
  0x7e   : > { %1146 = vmatprep.subr.bf16.mxu1 %v2013_v6  ;;  %v2017_v9 = vld [vmem:[%s2594_s9 + $0x44] ss:$16 sps:$4 sm:$0xff]   ;;  %v2021_v11 = vld [vmem:[%s2594_s9 + $0x40] ss:$16 sps:$4 sm:$0xff]   ;;  %1176 = vmatprep.mubr.bf16.mxu1 %v1650_v52  ;;  %v2110_v6 = vld [vmem:[%s2594_s9 + $0x20c] ss:$16 sps:$4 sm:$0xff]  }
  0x7f   : > { %v2019_v10 = vld [vmem:[%s2594_s9 + $0x244] ss:$16 sps:$4 sm:$0xff]   ;;  %v2022_v12 = vld [vmem:[%s2594_s9 + $0x240] ss:$16 sps:$4 sm:$0xff]  }
  0x80   : > { %1106 = vmatpush1.bf16.msra.mxu0 %v2015_v7  ;;  %v2023_v13 = vld [vmem:[%s2594_s9 + $0x64] ss:$16 sps:$4 sm:$0xff]   ;;  %v2027_v15 = vld [vmem:[%s2594_s9 + $0x60] ss:$16 sps:$4 sm:$0xff]  }
  0x81   : > { %1147 = vmatpush1.bf16.msra.mxu1 %v2016_v8  ;;  %1107 = vmatprep.subr.bf16.mxu0 %v2017_v9  ;;  %v2025_v14 = vld [vmem:[%s2594_s9 + $0x264] ss:$16 sps:$4 sm:$0xff]   ;;  %v2028_v16 = vld [vmem:[%s2594_s9 + $0x260] ss:$16 sps:$4 sm:$0xff]   ;;  %v2678_v8 = vcombine.low %v320_v49, %v320_v49  ;;  %v2105_v9 = vld [vmem:[%s2594_s9 + $0x8] ss:$16 sps:$4 sm:$0xff]  }
  0x82   : > { %1148 = vmatprep.subr.bf16.mxu1 %v2019_v10  ;;  %v2029_v17 = vld [vmem:[%s2594_s9 + $0x84] ss:$16 sps:$4 sm:$0xff]   ;;  %v2033_v19 = vld [vmem:[%s2594_s9 + $0x80] ss:$16 sps:$4 sm:$0xff]   ;;  %v2108_v10 = vld [vmem:[%s2594_s9 + $0x208] ss:$16 sps:$4 sm:$0xff]  }
  0x83   : > { %v2031_v18 = vld [vmem:[%s2594_s9 + $0x284] ss:$16 sps:$4 sm:$0xff]   ;;  %v2034_v20 = vld [vmem:[%s2594_s9 + $0x280] ss:$16 sps:$4 sm:$0xff]   ;;  %v2165_v49 = vld [vmem:[%s2594_s9 + $0x148] ss:$16 sps:$4 sm:$0xff]  }
  0x84   : > { %1108 = vmatpush1.bf16.msra.mxu0 %v2021_v11  ;;  %v2035_v21 = vld [vmem:[%s2594_s9 + $0xa4] ss:$16 sps:$4 sm:$0xff]   ;;  %v2039_v23 = vld [vmem:[%s2594_s9 + $0xa0] ss:$16 sps:$4 sm:$0xff]   ;;  %v2113_v11 = vld [vmem:[%s2594_s9 + $0x2c] ss:$16 sps:$4 sm:$0xff]  }
  0x85   : > { %1149 = vmatpush1.bf16.msra.mxu1 %v2022_v12  ;;  %1109 = vmatprep.subr.bf16.mxu0 %v2023_v13  ;;  %v2037_v22 = vld [vmem:[%s2594_s9 + $0x2a4] ss:$16 sps:$4 sm:$0xff]   ;;  %v2040_v24 = vld [vmem:[%s2594_s9 + $0x2a0] ss:$16 sps:$4 sm:$0xff]   ;;  %v2116_v12 = vld [vmem:[%s2594_s9 + $0x22c] ss:$16 sps:$4 sm:$0xff]  }
  0x86   : > { %1150 = vmatprep.subr.bf16.mxu1 %v2025_v14  ;;  %v2041_v25 = vld [vmem:[%s2594_s9 + $0xc4] ss:$16 sps:$4 sm:$0xff]   ;;  %v2045_v27 = vld [vmem:[%s2594_s9 + $0xc0] ss:$16 sps:$4 sm:$0xff]   ;;  %v2111_v13 = vld [vmem:[%s2594_s9 + $0x28] ss:$16 sps:$4 sm:$0xff]  }
  0x87   : > { %v2043_v26 = vld [vmem:[%s2594_s9 + $0x2c4] ss:$16 sps:$4 sm:$0xff]   ;;  %v2046_v28 = vld [vmem:[%s2594_s9 + $0x2c0] ss:$16 sps:$4 sm:$0xff]   ;;  %v2114_v14 = vld [vmem:[%s2594_s9 + $0x228] ss:$16 sps:$4 sm:$0xff]  }
  0x88   : > { %1110 = vmatpush1.bf16.msra.mxu0 %v2027_v15  ;;  %v2047_v29 = vld [vmem:[%s2594_s9 + $0xe4] ss:$16 sps:$4 sm:$0xff]   ;;  %v2051_v31 = vld [vmem:[%s2594_s9 + $0xe0] ss:$16 sps:$4 sm:$0xff]   ;;  %v2119_v15 = vld [vmem:[%s2594_s9 + $0x4c] ss:$16 sps:$4 sm:$0xff]  }
  0x89   : > { %1151 = vmatpush1.bf16.msra.mxu1 %v2028_v16  ;;  %1111 = vmatprep.subr.bf16.mxu0 %v2029_v17  ;;  %v2049_v30 = vld [vmem:[%s2594_s9 + $0x2e4] ss:$16 sps:$4 sm:$0xff]   ;;  %v2052_v32 = vld [vmem:[%s2594_s9 + $0x2e0] ss:$16 sps:$4 sm:$0xff]   ;;  %v2122_v16 = vld [vmem:[%s2594_s9 + $0x24c] ss:$16 sps:$4 sm:$0xff]  }
  0x8a   : > { %1152 = vmatprep.subr.bf16.mxu1 %v2031_v18  ;;  %v2053_v33 = vld [vmem:[%s2594_s9 + $0x104] ss:$16 sps:$4 sm:$0xff]   ;;  %v2057_v35 = vld [vmem:[%s2594_s9 + $0x100] ss:$16 sps:$4 sm:$0xff]   ;;  %v2117_v17 = vld [vmem:[%s2594_s9 + $0x48] ss:$16 sps:$4 sm:$0xff]  }
  0x8b   : > { %v2055_v34 = vld [vmem:[%s2594_s9 + $0x304] ss:$16 sps:$4 sm:$0xff]   ;;  %v2058_v36 = vld [vmem:[%s2594_s9 + $0x300] ss:$16 sps:$4 sm:$0xff]   ;;  %v2120_v18 = vld [vmem:[%s2594_s9 + $0x248] ss:$16 sps:$4 sm:$0xff]  }
  0x8c   : > { %1112 = vmatpush1.bf16.msra.mxu0 %v2033_v19  ;;  %v2059_v37 = vld [vmem:[%s2594_s9 + $0x124] ss:$16 sps:$4 sm:$0xff]   ;;  %v2063_v39 = vld [vmem:[%s2594_s9 + $0x120] ss:$16 sps:$4 sm:$0xff]   ;;  %v2125_v19 = vld [vmem:[%s2594_s9 + $0x6c] ss:$16 sps:$4 sm:$0xff]  }
  0x8d   : > { %1153 = vmatpush1.bf16.msra.mxu1 %v2034_v20  ;;  %1113 = vmatprep.subr.bf16.mxu0 %v2035_v21  ;;  %v2061_v38 = vld [vmem:[%s2594_s9 + $0x324] ss:$16 sps:$4 sm:$0xff]   ;;  %v2064_v40 = vld [vmem:[%s2594_s9 + $0x320] ss:$16 sps:$4 sm:$0xff]   ;;  %v2128_v20 = vld [vmem:[%s2594_s9 + $0x26c] ss:$16 sps:$4 sm:$0xff]  }
  0x8e   : > { %1154 = vmatprep.subr.bf16.mxu1 %v2037_v22  ;;  %v2065_v41 = vld [vmem:[%s2594_s9 + $0x144] ss:$16 sps:$4 sm:$0xff]   ;;  %v2069_v43 = vld [vmem:[%s2594_s9 + $0x140] ss:$16 sps:$4 sm:$0xff]   ;;  %v2123_v21 = vld [vmem:[%s2594_s9 + $0x68] ss:$16 sps:$4 sm:$0xff]  }
  0x8f   : > { %v2067_v42 = vld [vmem:[%s2594_s9 + $0x344] ss:$16 sps:$4 sm:$0xff]   ;;  %v2070_v44 = vld [vmem:[%s2594_s9 + $0x340] ss:$16 sps:$4 sm:$0xff]   ;;  %v2126_v22 = vld [vmem:[%s2594_s9 + $0x268] ss:$16 sps:$4 sm:$0xff]  }
  0x90   : > { %1114 = vmatpush1.bf16.msra.mxu0 %v2039_v23  ;;  %v2071_v45 = vld [vmem:[%s2594_s9 + $0x164] ss:$16 sps:$4 sm:$0xff]   ;;  %v2075_v50 = vld [vmem:[%s2594_s9 + $0x160] ss:$16 sps:$4 sm:$0xff]   ;;  %v2131_v23 = vld [vmem:[%s2594_s9 + $0x8c] ss:$16 sps:$4 sm:$0xff]  }
  0x91   : > { %1155 = vmatpush1.bf16.msra.mxu1 %v2040_v24  ;;  %1115 = vmatprep.subr.bf16.mxu0 %v2041_v25  ;;  %v2073_v46 = vld [vmem:[%s2594_s9 + $0x364] ss:$16 sps:$4 sm:$0xff]   ;;  %v2076_v51 = vld [vmem:[%s2594_s9 + $0x360] ss:$16 sps:$4 sm:$0xff]   ;;  %v2134_v24 = vld [vmem:[%s2594_s9 + $0x28c] ss:$16 sps:$4 sm:$0xff]  }
  0x92   : > { %1156 = vmatprep.subr.bf16.mxu1 %v2043_v26  ;;  %v319_v47 = vld [vmem:[%s2587_s14] sm:$0xff]  ;;  %v2129_v25 = vld [vmem:[%s2594_s9 + $0x88] ss:$16 sps:$4 sm:$0xff]  }
  0x93   : > { %v2652_v48 = vcombine.high %v319_v47, %v319_v47  ;;  %v2077_v53 = vld [vmem:[%s2594_s9 + $0x184] ss:$16 sps:$4 sm:$0xff]   ;;  %v2081_v55 = vld [vmem:[%s2594_s9 + $0x180] ss:$16 sps:$4 sm:$0xff]   ;;  %v2676_v7 = vcombine.low %v319_v47, %v319_v47  ;;  %v2132_v26 = vld [vmem:[%s2594_s9 + $0x288] ss:$16 sps:$4 sm:$0xff]  }
  0x94   : > { %1116 = vmatpush1.bf16.msra.mxu0 %v2045_v27  ;;  %v2079_v54 = vld [vmem:[%s2594_s9 + $0x384] ss:$16 sps:$4 sm:$0xff]   ;;  %v2082_v56 = vld [vmem:[%s2594_s9 + $0x380] ss:$16 sps:$4 sm:$0xff]   ;;  %v2137_v27 = vld [vmem:[%s2594_s9 + $0xac] ss:$16 sps:$4 sm:$0xff]  }
  0x95   : > { %1157 = vmatpush1.bf16.msra.mxu1 %v2046_v28  ;;  %1117 = vmatprep.subr.bf16.mxu0 %v2047_v29  ;;  %v2083_v57 = vld [vmem:[%s2594_s9 + $0x1a4] ss:$16 sps:$4 sm:$0xff]   ;;  %v2087_v59 = vld [vmem:[%s2594_s9 + $0x1a0] ss:$16 sps:$4 sm:$0xff]   ;;  %v2140_v28 = vld [vmem:[%s2594_s9 + $0x2ac] ss:$16 sps:$4 sm:$0xff]  }
  0x96   : > { %1158 = vmatprep.subr.bf16.mxu1 %v2049_v30  ;;  %1135 = vmatprep.mubr.bf16.mxu0 %v2652_v48  ;;  %v2085_v58 = vld [vmem:[%s2594_s9 + $0x3a4] ss:$16 sps:$4 sm:$0xff]   ;;  %v2088_v60 = vld [vmem:[%s2594_s9 + $0x3a0] ss:$16 sps:$4 sm:$0xff]   ;;  %v2135_v29 = vld [vmem:[%s2594_s9 + $0xa8] ss:$16 sps:$4 sm:$0xff]  }
  0x97   : > { %v2089_v61 = vld [vmem:[%s2594_s9 + $0x1c4] ss:$16 sps:$4 sm:$0xff]   ;;  %v2093_v63 = vld [vmem:[%s2594_s9 + $0x1c0] ss:$16 sps:$4 sm:$0xff]   ;;  %v2138_v30 = vld [vmem:[%s2594_s9 + $0x2a8] ss:$16 sps:$4 sm:$0xff]  }
  0x98   : > { %1118 = vmatpush1.bf16.msra.mxu0 %v2051_v31  ;;  %v2091_v62 = vld [vmem:[%s2594_s9 + $0x3c4] ss:$16 sps:$4 sm:$0xff]   ;;  %v2094_v0 = vld [vmem:[%s2594_s9 + $0x3c0] ss:$16 sps:$4 sm:$0xff]   ;;  %v2143_v31 = vld [vmem:[%s2594_s9 + $0xcc] ss:$16 sps:$4 sm:$0xff]  }
  0x99   : > { %1159 = vmatpush1.bf16.msra.mxu1 %v2052_v32  ;;  %1119 = vmatprep.subr.bf16.mxu0 %v2053_v33  ;;  %v2095_v1 = vld [vmem:[%s2594_s9 + $0x1e4] ss:$16 sps:$4 sm:$0xff]   ;;  %v2099_v3 = vld [vmem:[%s2594_s9 + $0x1e0] ss:$16 sps:$4 sm:$0xff]   ;;  %v2146_v32 = vld [vmem:[%s2594_s9 + $0x2cc] ss:$16 sps:$4 sm:$0xff]  }
  0x9a   : > { %1160 = vmatprep.subr.bf16.mxu1 %v2055_v34  ;;  %v2097_v2 = vld [vmem:[%s2594_s9 + $0x3e4] ss:$16 sps:$4 sm:$0xff]   ;;  %v2100_v4 = vld [vmem:[%s2594_s9 + $0x3e0] ss:$16 sps:$4 sm:$0xff]   ;;  %v2141_v33 = vld [vmem:[%s2594_s9 + $0xc8] ss:$16 sps:$4 sm:$0xff]  }
  0x9b   : > { %v2144_v34 = vld [vmem:[%s2594_s9 + $0x2c8] ss:$16 sps:$4 sm:$0xff]   ;;  %v2167_v47 = vld [vmem:[%s2594_s9 + $0x14c] ss:$16 sps:$4 sm:$0xff]  }
  0x9c   : > { %1120 = vmatpush1.bf16.msra.mxu0 %v2057_v35  ;;  %v2149_v35 = vld [vmem:[%s2594_s9 + $0xec] ss:$16 sps:$4 sm:$0xff]  }
  0x9d   : > { %1161 = vmatpush1.bf16.msra.mxu1 %v2058_v36  ;;  %1121 = vmatprep.subr.bf16.mxu0 %v2059_v37  ;;  %v2152_v36 = vld [vmem:[%s2594_s9 + $0x2ec] ss:$16 sps:$4 sm:$0xff]   ;;  %v2147_v37 = vld [vmem:[%s2594_s9 + $0xe8] ss:$16 sps:$4 sm:$0xff]  }
  0x9e   : > { %1162 = vmatprep.subr.bf16.mxu1 %v2061_v38  ;;  %v2150_v38 = vld [vmem:[%s2594_s9 + $0x2e8] ss:$16 sps:$4 sm:$0xff]  }
  0xa0   : > { %1122 = vmatpush1.bf16.msra.mxu0 %v2063_v39  ;;  %v2155_v39 = vld [vmem:[%s2594_s9 + $0x10c] ss:$16 sps:$4 sm:$0xff]  }
  0xa1   : > { %1163 = vmatpush1.bf16.msra.mxu1 %v2064_v40  ;;  %1123 = vmatprep.subr.bf16.mxu0 %v2065_v41  ;;  %v2158_v40 = vld [vmem:[%s2594_s9 + $0x30c] ss:$16 sps:$4 sm:$0xff]   ;;  %v2153_v41 = vld [vmem:[%s2594_s9 + $0x108] ss:$16 sps:$4 sm:$0xff]  }
  0xa2   : > { %1164 = vmatprep.subr.bf16.mxu1 %v2067_v42  ;;  %v2156_v42 = vld [vmem:[%s2594_s9 + $0x308] ss:$16 sps:$4 sm:$0xff]  }
  0xa4   : > { %1124 = vmatpush1.bf16.msra.mxu0 %v2069_v43  ;;  %v2161_v43 = vld [vmem:[%s2594_s9 + $0x12c] ss:$16 sps:$4 sm:$0xff]  }
  0xa5   : > { %1165 = vmatpush1.bf16.msra.mxu1 %v2070_v44  ;;  %1125 = vmatprep.subr.bf16.mxu0 %v2071_v45  ;;  %v2164_v44 = vld [vmem:[%s2594_s9 + $0x32c] ss:$16 sps:$4 sm:$0xff]   ;;  %v2159_v45 = vld [vmem:[%s2594_s9 + $0x128] ss:$16 sps:$4 sm:$0xff]  }
  0xa6   : > { %1166 = vmatprep.subr.bf16.mxu1 %v2073_v46  ;;  %v2162_v46 = vld [vmem:[%s2594_s9 + $0x328] ss:$16 sps:$4 sm:$0xff]  }
  0xa8   : > { %1126 = vmatpush1.bf16.msra.mxu0 %v2075_v50  ;;  %v2168_v50 = vld [vmem:[%s2594_s9 + $0x348] ss:$16 sps:$4 sm:$0xff]  }
  0xa9   : > { %1167 = vmatpush1.bf16.msra.mxu1 %v2076_v51  ;;  %1127 = vmatprep.subr.bf16.mxu0 %v2077_v53  ;;  %v2173_v51 = vld [vmem:[%s2594_s9 + $0x16c] ss:$16 sps:$4 sm:$0xff]   ;;  %v2171_v53 = vld [vmem:[%s2594_s9 + $0x168] ss:$16 sps:$4 sm:$0xff]  }
  0xaa   : > { %1168 = vmatprep.subr.bf16.mxu1 %v2079_v54  ;;  %v2174_v54 = vld [vmem:[%s2594_s9 + $0x368] ss:$16 sps:$4 sm:$0xff]  }
  0xac   : > { %1128 = vmatpush1.bf16.msra.mxu0 %v2081_v55  ;;  %v2179_v55 = vld [vmem:[%s2594_s9 + $0x18c] ss:$16 sps:$4 sm:$0xff]  }
  0xad   : > { %1169 = vmatpush1.bf16.msra.mxu1 %v2082_v56  ;;  %1129 = vmatprep.subr.bf16.mxu0 %v2083_v57  ;;  %v2182_v56 = vld [vmem:[%s2594_s9 + $0x38c] ss:$16 sps:$4 sm:$0xff]   ;;  %v2177_v57 = vld [vmem:[%s2594_s9 + $0x188] ss:$16 sps:$4 sm:$0xff]  }
  0xae   : > { %1170 = vmatprep.subr.bf16.mxu1 %v2085_v58  ;;  %v2180_v58 = vld [vmem:[%s2594_s9 + $0x388] ss:$16 sps:$4 sm:$0xff]  }
  0xb0   : > { %1130 = vmatpush1.bf16.msra.mxu0 %v2087_v59  ;;  %v2185_v59 = vld [vmem:[%s2594_s9 + $0x1ac] ss:$16 sps:$4 sm:$0xff]  }
  0xb1   : > { %1171 = vmatpush1.bf16.msra.mxu1 %v2088_v60  ;;  %1131 = vmatprep.subr.bf16.mxu0 %v2089_v61  ;;  %v2188_v60 = vld [vmem:[%s2594_s9 + $0x3ac] ss:$16 sps:$4 sm:$0xff]   ;;  %v2183_v61 = vld [vmem:[%s2594_s9 + $0x1a8] ss:$16 sps:$4 sm:$0xff]  }
  0xb2   : > { %1172 = vmatprep.subr.bf16.mxu1 %v2091_v62  ;;  %v2186_v62 = vld [vmem:[%s2594_s9 + $0x3a8] ss:$16 sps:$4 sm:$0xff]  }
  0xb4   : > { %1132 = vmatpush1.bf16.msra.mxu0 %v2093_v63  ;;  %v2191_v63 = vld [vmem:[%s2594_s9 + $0x1cc] ss:$16 sps:$4 sm:$0xff]  }
  0xb5   : > { %1173 = vmatpush1.bf16.msra.mxu1 %v2094_v0  ;;  %1133 = vmatprep.subr.bf16.mxu0 %v2095_v1  ;;  %v2194_v0 = vld [vmem:[%s2594_s9 + $0x3cc] ss:$16 sps:$4 sm:$0xff]   ;;  %v2189_v1 = vld [vmem:[%s2594_s9 + $0x1c8] ss:$16 sps:$4 sm:$0xff]  }
  0xb6   : > { %1174 = vmatprep.subr.bf16.mxu1 %v2097_v2  ;;  %v2192_v2 = vld [vmem:[%s2594_s9 + $0x3c8] ss:$16 sps:$4 sm:$0xff]  }
  0xb8   : > { %1134 = vmatpush1.bf16.msra.mxu0 %v2099_v3  ;;  %v2197_v3 = vld [vmem:[%s2594_s9 + $0x1ec] ss:$16 sps:$4 sm:$0xff]  }
  0xb9   : > { %1175 = vmatpush1.bf16.msra.mxu1 %v2100_v4  ;;  %1185 = vmatprep.subr.bf16.mxu0 %v2107_v5  ;;  %v2200_v4 = vld [vmem:[%s2594_s9 + $0x3ec] ss:$16 sps:$4 sm:$0xff]   ;;  %v2195_v5 = vld [vmem:[%s2594_s9 + $0x1e8] ss:$16 sps:$4 sm:$0xff]  }
  0xba   : > { %1226 = vmatprep.subr.bf16.mxu1 %v2110_v6  ;;  %v2198_v6 = vld [vmem:[%s2594_s9 + $0x3e8] ss:$16 sps:$4 sm:$0xff]  }
  0xbb   : > { %1136 = vmatmul.mubr.bf16.vlgmr.msra.gmra.mrb[0].mxu0 %v2676_v7 }
  0xbc   : > { %1177 = vmatmul.mubr.bf16.vlgmr.msra.gmra.mrb[0].mxu1 %v2678_v8  ;;  %1186 = vmatpush1.bf16.msra.mxu0 %v2105_v9 }
  0xbd   : > { %1227 = vmatpush1.bf16.msra.mxu1 %v2108_v10  ;;  %1187 = vmatprep.subr.bf16.mxu0 %v2113_v11  ;;  %v315_v10 = vld [vmem:[#allocation2] sm:$0xff] }
  0xbe   : > { %1228 = vmatprep.subr.bf16.mxu1 %v2116_v12  ;;  %1217 = vmatprep.mubr.bf16.mxu0 %v2652_v48  ;;  %v2170_v48 = vld [vmem:[%s2594_s9 + $0x34c] ss:$16 sps:$4 sm:$0xff]  }
  0xbf   : > { %1258 = vmatprep.mubr.bf16.mxu1 %v1650_v52  ;;  %v2176_v52 = vld [vmem:[%s2594_s9 + $0x36c] ss:$16 sps:$4 sm:$0xff]  }
  0xc0   : > { %1188 = vmatpush1.bf16.msra.mxu0 %v2111_v13 }
  0xc1   : > { %1229 = vmatpush1.bf16.msra.mxu1 %v2114_v14  ;;  %1189 = vmatprep.subr.bf16.mxu0 %v2119_v15  ;;  %v316_v14 = vld [vmem:[#allocation2 + $0x8] sm:$0xff] }
  0xc2   : > { %1230 = vmatprep.subr.bf16.mxu1 %v2122_v16 }
  0xc4   : > { %1190 = vmatpush1.bf16.msra.mxu0 %v2117_v17 }
  0xc5   : > { %1231 = vmatpush1.bf16.msra.mxu1 %v2120_v18  ;;  %1191 = vmatprep.subr.bf16.mxu0 %v2125_v19 }
  0xc6   : > { %1232 = vmatprep.subr.bf16.mxu1 %v2128_v20 }
  0xc8   : > { %1192 = vmatpush1.bf16.msra.mxu0 %v2123_v21 }
  0xc9   : > { %1233 = vmatpush1.bf16.msra.mxu1 %v2126_v22  ;;  %1193 = vmatprep.subr.bf16.mxu0 %v2131_v23 }
  0xca   : > { %1234 = vmatprep.subr.bf16.mxu1 %v2134_v24 }
  0xcc   : > { %1194 = vmatpush1.bf16.msra.mxu0 %v2129_v25 }
  0xcd   : > { %1235 = vmatpush1.bf16.msra.mxu1 %v2132_v26  ;;  %1195 = vmatprep.subr.bf16.mxu0 %v2137_v27  ;;  %v318_v26 = vld [vmem:[#allocation2 + $0x18] sm:$0xff] }
  0xce   : > { %1236 = vmatprep.subr.bf16.mxu1 %v2140_v28 }
  0xd0   : > { %1196 = vmatpush1.bf16.msra.mxu0 %v2135_v29 }
  0xd1   : > { %1237 = vmatpush1.bf16.msra.mxu1 %v2138_v30  ;;  %1197 = vmatprep.subr.bf16.mxu0 %v2143_v31 }
  0xd2   : > { %1238 = vmatprep.subr.bf16.mxu1 %v2146_v32 }
  0xd4   : > { %1198 = vmatpush1.bf16.msra.mxu0 %v2141_v33 }
  0xd5   : > { %1239 = vmatpush1.bf16.msra.mxu1 %v2144_v34  ;;  %1199 = vmatprep.subr.bf16.mxu0 %v2149_v35  ;;  %v1325_v35 = vld [vmem:[#allocation8 + $0x80] sm:$0xff] (!%p1779_p10) }
  0xd6   : > { %1240 = vmatprep.subr.bf16.mxu1 %v2152_v36  ;;  %v1326_v36 = vld [vmem:[#allocation8 + $0x88] sm:$0xff] (!%p1779_p10) }
  0xd8   : > { %1200 = vmatpush1.bf16.msra.mxu0 %v2147_v37  ;;  %v1309_v37 = vld [vmem:[#allocation8] sm:$0xff] (!%p1779_p10) }
  0xd9   : > { %1241 = vmatpush1.bf16.msra.mxu1 %v2150_v38  ;;  %1201 = vmatprep.subr.bf16.mxu0 %v2155_v39  ;;  %v1858_v38 = vpack.c.bf16 (!%p1779_p10), %v1326_v36, %v1325_v35  ;;  %v1310_v39 = vld [vmem:[#allocation8 + $0x8] sm:$0xff] (!%p1779_p10) }
  0xda   : > { %1242 = vmatprep.subr.bf16.mxu1 %v2158_v40  ;;  %v1357_v40 = vld [vmem:[#allocation8 + $0x180] sm:$0xff] (!%p1779_p10) }
  0xdc   : > { %1202 = vmatpush1.bf16.msra.mxu0 %v2153_v41  ;;  %v1358_v41 = vld [vmem:[#allocation8 + $0x188] sm:$0xff] (!%p1779_p10) }
  0xdd   : > { %1243 = vmatpush1.bf16.msra.mxu1 %v2156_v42  ;;  %1203 = vmatprep.subr.bf16.mxu0 %v2161_v43  ;;  %v1860_v42 = vpack.c.bf16 (!%p1779_p10), %v1310_v39, %v1309_v37  ;;  %v1890_v43 = vpack.c.bf16 (!%p1779_p10), %v1358_v41, %v1357_v40  ;;  %v1320_v39 = vld [vmem:[#allocation8 + $0x58] sm:$0xff] (!%p1779_p10)  ;;  %v1351_v40 = vld [vmem:[#allocation8 + $0x150] sm:$0xff] (!%p1779_p10) }
  0xde   : > { %1244 = vmatprep.subr.bf16.mxu1 %v2164_v44  ;;  %v1341_v44 = vld [vmem:[#allocation8 + $0x100] sm:$0xff] (!%p1779_p10) }
  0xe0   : > { %1204 = vmatpush1.bf16.msra.mxu0 %v2159_v45  ;;  %v1342_v45 = vld [vmem:[#allocation8 + $0x108] sm:$0xff] (!%p1779_p10) }
  0xe1   : > { %1245 = vmatpush1.bf16.msra.mxu1 %v2162_v46  ;;  %1205 = vmatprep.subr.bf16.mxu0 %v2167_v47  ;;  %v1327_v46 = vld [vmem:[#allocation8 + $0x90] sm:$0xff] (!%p1779_p10)  ;;  %v1892_v47 = vpack.c.bf16 (!%p1779_p10), %v1342_v45, %v1341_v44  ;;  %v1338_v44 = vld [vmem:[#allocation8 + $0xe8] sm:$0xff] (!%p1779_p10) }
  0xe2   : > { %1246 = vmatprep.subr.bf16.mxu1 %v2170_v48  ;;  %v1328_v48 = vld [vmem:[#allocation8 + $0x98] sm:$0xff] (!%p1779_p10) }
  0xe4   : > { %1206 = vmatpush1.bf16.msra.mxu0 %v2165_v49  ;;  %v1311_v49 = vld [vmem:[#allocation8 + $0x10] sm:$0xff] (!%p1779_p10) }
  0xe5   : > { %1247 = vmatpush1.bf16.msra.mxu1 %v2168_v50  ;;  %1207 = vmatprep.subr.bf16.mxu0 %v2173_v51  ;;  %v1312_v50 = vld [vmem:[#allocation8 + $0x18] sm:$0xff] (!%p1779_p10)  ;;  %v1862_v51 = vpack.c.bf16 (!%p1779_p10), %v1328_v48, %v1327_v46  ;;  %v1370_v48 = vld [vmem:[#allocation8 + $0x1e8] sm:$0xff] (!%p1779_p10) }
  0xe6   : > { %1248 = vmatprep.subr.bf16.mxu1 %v2176_v52  ;;  %v1864_v52 = vpack.c.bf16 (!%p1779_p10), %v1312_v50, %v1311_v49  ;;  %v1321_v50 = vld [vmem:[#allocation8 + $0x60] sm:$0xff] (!%p1779_p10) }
  0xe8   : > { %1208 = vmatpush1.bf16.msra.mxu0 %v2171_v53  ;;  %v1359_v53 = vld [vmem:[#allocation8 + $0x190] sm:$0xff] (!%p1779_p10) }
  0xe9   : > { %1249 = vmatpush1.bf16.msra.mxu1 %v2174_v54  ;;  %1209 = vmatprep.subr.bf16.mxu0 %v2179_v55  ;;  %v1360_v54 = vld [vmem:[#allocation8 + $0x198] sm:$0xff] (!%p1779_p10)  ;;  %v1343_v55 = vld [vmem:[#allocation8 + $0x110] sm:$0xff] (!%p1779_p10) }
  0xea   : > { %1250 = vmatprep.subr.bf16.mxu1 %v2182_v56  ;;  %v1894_v56 = vpack.c.bf16 (!%p1779_p10), %v1360_v54, %v1359_v53 }
  0xec   : > { %1210 = vmatpush1.bf16.msra.mxu0 %v2177_v57  ;;  %v1344_v57 = vld [vmem:[#allocation8 + $0x118] sm:$0xff] (!%p1779_p10) }
  0xed   : > { %1251 = vmatpush1.bf16.msra.mxu1 %v2180_v58  ;;  %1211 = vmatprep.subr.bf16.mxu0 %v2185_v59  ;;  %v1329_v58 = vld [vmem:[#allocation8 + $0xa0] sm:$0xff] (!%p1779_p10)  ;;  %v1330_v59 = vld [vmem:[#allocation8 + $0xa8] sm:$0xff] (!%p1779_p10) }
  0xee   : > { %1252 = vmatprep.subr.bf16.mxu1 %v2188_v60  ;;  %v1896_v60 = vpack.c.bf16 (!%p1779_p10), %v1344_v57, %v1343_v55  ;;  %v1354_v55 = vld [vmem:[#allocation8 + $0x168] sm:$0xff] (!%p1779_p10)  ;;  %v1283_v57 = vld [vmem:[%s2803_s2] sm:$0xf] (!%p1779_p10) }
  0xf0   : > { %1212 = vmatpush1.bf16.msra.mxu0 %v2183_v61  ;;  %v1866_v61 = vpack.c.bf16 (!%p1779_p10), %v1330_v59, %v1329_v58  ;;  %v1339_v59 = vld [vmem:[#allocation8 + $0xf0] sm:$0xff] (!%p1779_p10) }
  0xf1   : > { %1253 = vmatpush1.bf16.msra.mxu1 %v2186_v62  ;;  %1213 = vmatprep.subr.bf16.mxu0 %v2191_v63  ;;  %v1313_v62 = vld [vmem:[#allocation8 + $0x20] sm:$0xff] (!%p1779_p10)  ;;  %v1314_v63 = vld [vmem:[#allocation8 + $0x28] sm:$0xff] (!%p1779_p10) }
  0xf2   : > { %1254 = vmatprep.subr.bf16.mxu1 %v2194_v0  ;;  %v1361_v0 = vld [vmem:[#allocation8 + $0x1a0] sm:$0xff] (!%p1779_p10) }
  0xf4   : > { %1214 = vmatpush1.bf16.msra.mxu0 %v2189_v1  ;;  %v1362_v1 = vld [vmem:[#allocation8 + $0x1a8] sm:$0xff] (!%p1779_p10) }
  0xf5   : > { %1255 = vmatpush1.bf16.msra.mxu1 %v2192_v2  ;;  %1215 = vmatprep.subr.bf16.mxu0 %v2197_v3  ;;  %v1345_v2 = vld [vmem:[#allocation8 + $0x120] sm:$0xff] (!%p1779_p10)  ;;  %v1346_v3 = vld [vmem:[#allocation8 + $0x128] sm:$0xff] (!%p1779_p10) }
  0xf6   : > { %1256 = vmatprep.subr.bf16.mxu1 %v2200_v4  ;;  %v1868_v4 = vpack.c.bf16 (!%p1779_p10), %v1314_v63, %v1313_v62 }
  0xf8   : > { %1216 = vmatpush1.bf16.msra.mxu0 %v2195_v5  ;;  %v1898_v5 = vpack.c.bf16 (!%p1779_p10), %v1362_v1, %v1361_v0  ;;  %v1371_v0 = vld [vmem:[#allocation8 + $0x1f0] sm:$0xff] (!%p1779_p10)  ;;  %v1372_v1 = vld [vmem:[#allocation8 + $0x1f8] sm:$0xff] (!%p1779_p10) }
  0xf9   : > { %1257 = vmatpush1.bf16.msra.mxu1 %v2198_v6  ;;  %1859 = vmatprep.subr.bf16.mxu0 (!%p1779_p10), %v1858_v38  ;;  %v1331_v6 = vld [vmem:[#allocation8 + $0xb0] sm:$0xff] (!%p1779_p10) }
  0xfa   : > { %1891 = vmatprep.subr.bf16.mxu1 (!%p1779_p10), %v1890_v43  ;;  %v1319_v38 = vld [vmem:[#allocation8 + $0x50] sm:$0xff] (!%p1779_p10)  ;;  %v1337_v43 = vld [vmem:[#allocation8 + $0xe0] sm:$0xff] (!%p1779_p10) }
  0xfb   : > { %1218 = vmatmul.mubr.bf16.vlgmr.msra.gmra.mrb[4].mxu0 %v2676_v7  ;;  %v317_v7 = vld [vmem:[#allocation2 + $0x10] sm:$0xff]  ;;  %v1880_v49 = vpack.c.bf16 (!%p1779_p10), %v1320_v39, %v1319_v38  ;;  %v1882_v54 = vpack.c.bf16 (!%p1779_p10), %v1338_v44, %v1337_v43 }
  0xfc   : > { %1259 = vmatmul.mubr.bf16.vlgmr.msra.gmra.mrb[4].mxu1 %v2678_v8  ;;  %1861 = vmatpush3.bf16.msra.mxu0 (!%p1779_p10), %v1860_v42  ;;  %v1352_v42 = vld [vmem:[#allocation8 + $0x158] sm:$0xff] (!%p1779_p10) }
  0xfd   : > { %1893 = vmatpush3.bf16.msra.mxu1 (!%p1779_p10), %v1892_v47  ;;  %1863 = vmatprep.subr.bf16.mxu0 (!%p1779_p10), %v1862_v51  ;;  %v1369_v47 = vld [vmem:[#allocation8 + $0x1e0] sm:$0xff] (!%p1779_p10)  ;;  %v1322_v51 = vld [vmem:[#allocation8 + $0x68] sm:$0xff] (!%p1779_p10)  ;;  %v1912_v53 = vpack.c.bf16 (!%p1779_p10), %v1352_v42, %v1351_v40 }
  0xfe   : > { %1895 = vmatprep.subr.bf16.mxu1 (!%p1779_p10), %v1894_v56  ;;  %v1914_v58 = vpack.c.bf16 (!%p1779_p10), %v1370_v48, %v1369_v47 }
 0x100   : > { %1865 = vmatpush3.bf16.msra.mxu0 (!%p1779_p10), %v1864_v52  ;;  %v1353_v52 = vld [vmem:[#allocation8 + $0x160] sm:$0xff] (!%p1779_p10) }
 0x101   : > { %1897 = vmatpush3.bf16.msra.mxu1 (!%p1779_p10), %v1896_v60  ;;  %1867 = vmatprep.subr.bf16.mxu0 (!%p1779_p10), %v1866_v61  ;;  %v1340_v60 = vld [vmem:[#allocation8 + $0xf8] sm:$0xff] (!%p1779_p10) }
 0x102   : > { %1899 = vmatprep.subr.bf16.mxu1 (!%p1779_p10), %v1898_v5 }
 0x104   : > { %1869 = vmatpush3.bf16.msra.mxu0 (!%p1779_p10), %v1868_v4 }
 0x18e   : > { %v1137_v9 = vpop.f32.mrb[0].mxu0 }
 0x18f   : > { %v1178_v11 = vpop.f32.mrb[0].mxu1  ;;  %v1139_v13 = vpop.f32.mrb[1].mxu0 }
 0x190   : > { %v1179_v12 = vadd.f32 %v1178_v11, %v1137_v9  ;;  %v1180_v15 = vpop.f32.mrb[1].mxu1  ;;  %v1141_v17 = vpop.f32.mrb[2].mxu0  ;;  %v1332_v9 = vld [vmem:[#allocation8 + $0xb8] sm:$0xff] (!%p1779_p10)  ;;  %v1900_v11 = vpack.c.bf16 (!%p1779_p10), %v1346_v3, %v1345_v2  ;;  %v1884_v3 = vpack.c.bf16 (!%p1779_p10), %v1322_v51, %v1321_v50 }
 0x191   : > { %v1181_v16 = vadd.f32 %v1180_v15, %v1139_v13  ;;  %v1182_v18 = vpop.f32.mrb[2].mxu1  ;;  %v1142_v20 = vpop.f32.mrb[3].mxu0  ;;  %v1316_v13 = vld [vmem:[#allocation8 + $0x38] sm:$0xff] (!%p1779_p10)  ;;  %v1347_v17 = vld [vmem:[#allocation8 + $0x130] sm:$0xff] (!%p1779_p10) }
 0x192   : > { %v1267_v19 = vadd.f32 %v1179_v12, %v315_v10  ;;  %v1183_v21 = vpop.f32.mrb[3].mxu1  ;;  %v1315_v10 = vld [vmem:[#allocation8 + $0x30] sm:$0xff] (!%p1779_p10)  ;;  %v1870_v12 = vpack.c.bf16 (!%p1779_p10), %v1332_v9, %v1331_v6  ;;  %v1364_v15 = vld [vmem:[#allocation8 + $0x1b8] sm:$0xff] (!%p1779_p10)  ;;  %v1285_v20 = vlaneseq (!%p1779_p10)  ;;  %1901 = vmatpush3.bf16.msra.mxu1 (!%p1779_p10), %v1900_v11  ;;  %v1916_v9 = vpack.c.bf16 (!%p1779_p10), %v1354_v55, %v1353_v52 }
 0x193   : > { %v1268_v22 = vadd.f32 %v1181_v16, %v316_v14  ;;  %v1363_v14 = vld [vmem:[#allocation8 + $0x1b0] sm:$0xff] (!%p1779_p10)  ;;  %v1348_v18 = vld [vmem:[#allocation8 + $0x138] sm:$0xff] (!%p1779_p10)  ;;  %v1334_v21 = vld [vmem:[#allocation8 + $0xc8] sm:$0xff] (!%p1779_p10) }
 0x194   : > { %1271 = vst [vmem:[#allocation2] sm:$0xff] %v1267_v19  ;;  %v1902_v16 = vpack.c.bf16 (!%p1779_p10), %v1364_v15, %v1363_v14  ;;  %v1333_v19 = vld [vmem:[#allocation8 + $0xc0] sm:$0xff] (!%p1779_p10)  ;;  %1871 = vmatprep.subr.bf16.mxu0 (!%p1779_p10), %v1870_v12  ;;  %v1323_v11 = vld [vmem:[#allocation8 + $0x70] sm:$0xff] (!%p1779_p10)  ;;  %v1324_v12 = vld [vmem:[#allocation8 + $0x78] sm:$0xff] (!%p1779_p10) }
 0x195   : > { %1272 = vst [vmem:[#allocation2 + $0x8] sm:$0xff] %v1268_v22  ;;  %v1872_v22 = vpack.c.bf16 (!%p1779_p10), %v1316_v13, %v1315_v10  ;;  %v1886_v10 = vpack.c.bf16 (!%p1779_p10), %v1340_v60, %v1339_v59  ;;  %v1918_v13 = vpack.c.bf16 (!%p1779_p10), %v1372_v1, %v1371_v0  ;;  %v1355_v14 = vld [vmem:[#allocation8 + $0x170] sm:$0xff] (!%p1779_p10)  ;;  %v1356_v15 = vld [vmem:[#allocation8 + $0x178] sm:$0xff] (!%p1779_p10) }
 0x196   : > { %1903 = vmatprep.subr.bf16.mxu1 (!%p1779_p10), %v1902_v16 }
 0x197   : > { %1873 = vmatpush3.bf16.msra.mxu0 (!%p1779_p10), %v1872_v22 }
 0x19c   : > { %v1280_v56 = vld [vmem:[#allocation2 + $0x8] sm:$0xff] (!%p1779_p10) }
 0x1ce   : > { %v1219_v23 = vpop.f32.mrb[4].mxu0 }
 0x1cf   : > { %v1260_v24 = vpop.f32.mrb[4].mxu1  ;;  %v1221_v25 = vpop.f32.mrb[5].mxu0  ;;  %1278 = sbr.rel (%p1779_p10) target bundleno = 733 (0x2dd), region = 60 }
 0x1d0   : > { %v1261_v8 = vadd.f32 %v1260_v24, %v1219_v23  ;;  %v1262_v27 = vpop.f32.mrb[5].mxu1  ;;  %v1223_v29 = vpop.f32.mrb[6].mxu0  ;;  %v1365_v23 = vld [vmem:[#allocation8 + $0x1c0] sm:$0xff] (!%p1779_p10)  ;;  %v1904_v24 = vpack.c.bf16 (!%p1779_p10), %v1348_v18, %v1347_v17  ;;  %v1888_v17 = vpack.c.bf16 (!%p1779_p10), %v1324_v12, %v1323_v11 }
 0x1d1   : > { %v1263_v28 = vadd.f32 %v1262_v27, %v1221_v25  ;;  %v1264_v30 = vpop.f32.mrb[6].mxu1  ;;  %v1224_v32 = vpop.f32.mrb[7].mxu0  ;;  %v1317_v25 = vld [vmem:[#allocation8 + $0x40] sm:$0xff] (!%p1779_p10)  ;;  %v1350_v29 = vld [vmem:[#allocation8 + $0x148] sm:$0xff] (!%p1779_p10) }
 0x1d2   : > { %v1269_v31 = vadd.f32 %v1261_v8, %v317_v7  ;;  %v1265_v33 = vpop.f32.mrb[7].mxu1  ;;  %v1366_v7 = vld [vmem:[#allocation8 + $0x1c8] sm:$0xff] (!%p1779_p10)  ;;  %v1874_v8 = vpack.c.bf16 (!%p1779_p10), %v1334_v21, %v1333_v19  ;;  %v1349_v27 = vld [vmem:[#allocation8 + $0x140] sm:$0xff] (!%p1779_p10)  ;;  %v1335_v30 = vld [vmem:[#allocation8 + $0xd0] sm:$0xff] (!%p1779_p10)  ;;  %v2748_v32 = vshrl.u32 (!%p1779_p10), %v1285_v20, 7  ;;  %1905 = vmatpush3.bf16.msra.mxu1 (!%p1779_p10), %v1904_v24  ;;  %v1920_v20 = vpack.c.bf16 (!%p1779_p10), %v1356_v15, %v1355_v14 }
 0x1d3   : > { %v1270_v34 = vadd.f32 %v1263_v28, %v318_v26  ;;  %v1318_v26 = vld [vmem:[#allocation8 + $0x48] sm:$0xff] (!%p1779_p10)  ;;  %v1906_v28 = vpack.c.bf16 (!%p1779_p10), %v1366_v7, %v1365_v23  ;;  %v1367_v33 = vld [vmem:[#allocation8 + $0x1d0] sm:$0xff] (!%p1779_p10)  ;;  %v1908_v36 = vpack.c.bf16 (!%p1779_p10), %v1350_v29, %v1349_v27  ;;  %v1279_v18 = vld [vmem:[#allocation2] sm:$0xff] (!%p1779_p10) }
 0x1d4   : > { %1273 = vst [vmem:[#allocation2 + $0x10] sm:$0xff] %v1269_v31  ;;  %v1336_v31 = vld [vmem:[#allocation8 + $0xd8] sm:$0xff] (!%p1779_p10)  ;;  %v1876_v35 = vpack.c.bf16 (!%p1779_p10), %v1318_v26, %v1317_v25  ;;  %1875 = vmatprep.subr.bf16.mxu0 (!%p1779_p10), %v1874_v8  ;;  %v1291_v45 = vsub.s32 (!%p1779_p10), 1, %v2748_v32  ;;  %v1299_v46 = vsub.s32 (!%p1779_p10), 3, %v2748_v32  ;;  %v1287_v2 = vsub.s32 (!%p1779_p10), 0, %v2748_v32 }
 0x1d5   : > { %1274 = vst [vmem:[#allocation2 + $0x18] sm:$0xff] %v1270_v34  ;;  %v1368_v34 = vld [vmem:[#allocation8 + $0x1d8] sm:$0xff] (!%p1779_p10)  ;;  %v1878_v37 = vpack.c.bf16 (!%p1779_p10), %v1336_v31, %v1335_v30  ;;  %1907 = vmatprep.subr.bf16.mxu1 (!%p1779_p10), %v1906_v28  ;;  %v1295_v6 = vsub.s32 (!%p1779_p10), 2, %v2748_v32  ;;  %v1780_v24 = vld [vmem:[%s2805_s4] ss:$0 sm:$0xff] (!%p1779_p10) }
 0x1d6   : > { %v1910_v41 = vpack.c.bf16 %v1368_v34, %v1367_v33  ;;  %1877 = vmatpush3.bf16.msra.mxu0 %v1876_v35  ;;  %1909 = vmatpush3.bf16.msra.mxu1 %v1908_v36  ;;  %v1292_v61 = vrot.slane %v1283_v57, %v1291_v45  ;;  %v1300_v63 = vrot.slane %v1283_v57, %v1299_v46 }
 0x1d7   : > { %1879 = vmatprep.subr.bf16.mxu0 %v1878_v37  ;;  %v1288_v16 = vrot.slane %v1283_v57, %v1287_v2  ;;  %v1296_v19 = vrot.slane %v1283_v57, %v1295_v6 }
 0x1d8   : > { %1911 = vmatprep.subr.bf16.mxu1 %v1910_v41  ;;  %v1306_v4 = vadd.f32 %v1292_v61, %v1280_v56 }
 0x1d9   : > { %v1305_v22 = vadd.f32 %v1288_v16, %v1279_v18 }
 0x1da   : > { %1881 = vmatpush3.bf16.msra.mxu0 %v1880_v49  ;;  %1913 = vmatpush3.bf16.msra.mxu1 %v1912_v53 }
 0x1db   : > { %1883 = vmatprep.subr.bf16.mxu0 %v1882_v54  ;;  %1915 = vmatprep.subr.bf16.mxu1 %v1914_v58  ;;  %v1281_v21 = vld [vmem:[#allocation2 + $0x10] sm:$0xff] }
 0x1dc   : > { %v1282_v62 = vld [vmem:[#allocation2 + $0x18] sm:$0xff]  ;;  %1444 = vmatprep.mubr.f32.mxu0 %v1306_v4  ;;  %v1307_v23 = vadd.f32 %v1296_v19, %v1281_v21 }
 0x1dd   : > { %v1308_v5 = vadd.f32 %v1300_v63, %v1282_v62 }
 0x1de   : > { %1885 = vmatpush3.bf16.msra.mxu0 %v1884_v3  ;;  %1917 = vmatpush3.bf16.msra.mxu1 %v1916_v9 }
 0x1df   : > { %1514 = vmatprep.mubr.f32.mxu1 %v1308_v5  ;;  %1887 = vmatprep.subr.bf16.mxu0 %v1886_v10 }
 0x1e0   : > { %1919 = vmatprep.subr.bf16.mxu1 %v1918_v13 }
 0x1e2   : > { %1889 = vmatpush3.bf16.msra.mxu0 %v1888_v17  ;;  %1921 = vmatpush3.bf16.msra.mxu1 %v1920_v20 }
 0x1e5   : > { %1445 = vmatmul.mubr.f32.vlgmr.msra.gmra.mrb[0].mxu0 %v1305_v22  ;;  %1515 = vmatmul.mubr.f32.vlgmr.msra.gmra.mrb[0].mxu1 %v1307_v23 }
 0x2b8   : > { %v1820_v7 = vpop.f32.mrb[0].mxu0  ;;  %v1855_v25 = vpop.f32.mrb[0].mxu1 }
 0x2b9   : > { %v1821_v8 = vpop.f32.mrb[1].mxu0  ;;  %v1856_v27 = vpop.f32.mrb[1].mxu1 }
 0x2ba   : > { %v1822_v26 = vadd.f32 %v1821_v8, %v1820_v7  ;;  %v1857_v28 = vadd.f32 %v1856_v27, %v1855_v25 }
 0x2bc   : > { %v1447_v29 = vadd.f32 %v1822_v26, %v1780_v24 }
 0x2be   : > { %v1517_v30 = vadd.f32 %v1857_v28, %v1447_v29 }
 0x2c0   : > { %v1520_v31 = vsub.f32 0.0, %v1517_v30 }
 0x2c2   : > { %v1521_v32 = vmul.f32 1.442695, %v1520_v31 }
 0x2c4   : > { %2201 = vpow2.f32 %v1521_v32 }
 0x2ce   : > { %v2202_v33 = vpop.eup %2201 }
 0x2cf   : > { %v1523_v34 = vadd.f32 1.0, %v2202_v33 }
 0x2d1   : > { %2203 = vrcp.f32 %v1523_v34 }
 0x2db   : > { %v2204_v35 = vpop.eup %2203 }
 0x2dc   : > { %1525 = vst [vmem:[#allocation9] sm:$0xff] %v2204_v35 }
 0x2dd PF: > { %p1948_p11 = scmp.eq.s32.totalorder %s2451_s24, 1  ;;  %s2391_s16 = smov [#allocation9]  }
 0x2de   : > { %s1535_s18 = sshll.u32 %s2391_s16, 4  ;;  %s1536_s18 = int_to_ptr.vmem [resolvable:$true] %s1535_s18 }
 0x2df   : > { %s2293_s29 = scalar_lea.vmem %s1536_s18, 128  ;;  %p2300_p0 = scmp.lt.s32.totalorder %s1536_s18, %s1536_s18 }
 0x2e0   : > { %p2294_p13 = scmp.ne.s32.totalorder %s1536_s18, %s2293_s29  ;;  %p2301_p6 = scmp.lt.s32.totalorder %s2293_s29, %s2293_s29 }
 0x2e2   : > { %p2295_p2 = pnand %p2294_p13, %p1948_p11  ;;  %p2302_p4 = por %p2301_p6, %p2300_p0 }
 0x2e4   : > { %p2296_p3 = pneg %p2295_p2 }
 0x2e6   : > { %p2303_p5 = pnand %p2302_p4, %p2296_p3 }
 0x2e8   : > { %2306 = shalt.err (!%p2303_p5)
}
 0x2e9   : > { %s2307_s17 = scalar_lea.hbm %s2806_s5, 128 }
 0x2ea   : > { %p2308_p12 = scmp.ne.s32.totalorder %s2806_s5, %s2307_s17  ;;  %p2313_p8 = scmp.lt.u32.totalorder %s2307_s17, %s2806_s5 }
 0x2ec   : > { %p2309_p1 = pnand %p2308_p12, %p1948_p11 }
 0x2ee   : > { %p2310_p7 = pneg %p2309_p1 }
 0x2f0   : > { %p2315_p9 = pnand %p2313_p8, %p2310_p7 }
 0x2f2   : > { %2318 = shalt.err (!%p2315_p9)
}
 0x2f3   : > { %1931 = dma.vmem_to_hbm [thread:$0]  (%p1948_p11), %s1536_s18, 128, %s2806_s5, [#allocation5]  }
 0x2f4   : > { %2356 = dma.done.wait (%p1948_p11), [#allocation5], 128  }
 0x2f5   : > { %2358 = vsyncadd (%p1948_p11), [#allocation5], 4294967168 }
 0x2f6 PF: > { %s22_s23 = sadd.s32 1, %s2381_s23   ;;  %s2818_s18 = smov %s2365_s19 }
 0x2f7   : > { %p19_p10 = scmp.ge.s32.totalorder %s22_s23, 4   ;;  %s2819_s19 = smov %s2369_s20 }
 0x2f8   : > { %s2820_s20 = smov %s2507_s8  ;;  %s2821_s21 = smov %s2377_s22 }
 0x2f9   : > { %s2822_s22 = smov %s2824_s30  ;;  %21 = sbr.rel (!%p19_p10) target bundleno = 7 (0x7), region = 103 }
 0x300   :  { %1548 = vsyncpa [#allocation4], 1 }
 0x301   :  { %1550 = vsyncpa [#allocation4 + $0x1], 1 }
 0x302   :  { %1551 = vsyncpa [#allocation7], 1 }
 0x303   :  { %1553 = vsyncpa [#allocation7 + $0x1], 1 }
 0x304   :  { %1554 = vsyncpa [#allocation5], 1 }
 0x305   :  { %1556 = vsyncpa [#allocation5 + $0x1], 1 }

</bundles_post_ra>
